<compile_context>
chip_gen: v7x
topology: tpu7x:2x2x1
jax: 0.10.0
libtpu: 0.0.40
codegen_flags: <defaults>
</compile_context>

<pallas_src>
import jax
import jax.numpy as jnp
from jax.experimental import pallas as pl
from jax.experimental.pallas import tpu as pltpu

_LANES = 1024              # 8 sublanes * 128 lanes: one full f32 vreg per chunk
_VMEM_LIMIT = 32 << 20     # fits double-buffered in+out at 4 MiB blocks on all gens


def _make_zmf_kernel(a: float, b: float):
    a = float(a)
    b = float(b)
    mid = 0.5 * (a + b)
    inv_denom = 1.0 / (b - a)   # host constant; b != a assumed (as in the torch module)

    def kernel(x_ref, y_ref):
        # In-kernel cast: accepts f32 / bf16 / f16 input without a host-side pass.
        x = x_ref[...].astype(jnp.float32)
        t1 = (x - a) * inv_denom
        t2 = (x - b) * inv_denom
        left = 1.0 - 2.0 * (t1 * t1)    # explicit squares: pure VPU mul/add
        right = 2.0 * (t2 * t2)
        y = jnp.ones_like(x)
        y = jnp.where((a <= x) & (x < mid), left, y)
        y = jnp.where((mid <= x) & (x <= b), right, y)
        y = jnp.where(x >= b, 0.0, y)
        y_ref[...] = y

    return kernel


def _pick_chunks_per_block(n_chunks: int, max_block_chunks: int) -> int:
    """Chunks (1024 elems each) per grid step.

    Tiny inputs get a single full-extent block; anything bigger gets >= 2 grid
    steps (so v7x can shard the parallel axis across both TensorCores) with a
    sublane-aligned block height capped at max_block_chunks.
    """
    if n_chunks <= 16:
        return n_chunks
    per = min(max_block_chunks, -(-n_chunks // 2))   # ensure grid >= 2
    return max(8, (per // 8) * 8)                    # multiple of 8 (sublane-aligned)


def zshaped_mf(x: jax.Array, a: float, b: float, *, max_block_rows: int = 1024) -> jax.Array:
    """Pallas TPU implementation of ZShapedMf.forward for a 1-D x (any length, any float dtype).

    Output dtype is float32, matching the PyTorch module (torch.ones default).
    """
    n = x.shape[0]
    kernel = _make_zmf_kernel(a, b)
    cost = pl.CostEstimate(
        flops=10 * n,
        transcendentals=0,
        bytes_accessed=n * x.dtype.itemsize + n * 4,
    )
    cparams = pltpu.CompilerParams(
        dimension_semantics=("parallel",),
        vmem_limit_bytes=_VMEM_LIMIT,
    )

    if n % _LANES == 0:
        # Aligned length: free (bitcast) reshape to a lane-dense (rows, 1024) slab.
        rows = n // _LANES
        tm = _pick_chunks_per_block(rows, max_block_rows)
        y2d = pl.pallas_call(
            kernel,
            out_shape=jax.ShapeDtypeStruct((rows, _LANES), jnp.float32),
            grid=(pl.cdiv(rows, tm),),
            in_specs=[pl.BlockSpec((tm, _LANES), lambda i: (i, 0))],
            out_specs=pl.BlockSpec((tm, _LANES), lambda i: (i, 0)),
            compiler_params=cparams,
            cost_estimate=cost,
        )(x.reshape(rows, _LANES))
        return y2d.reshape(n)

    # Ragged length: stay 1-D.  No pad and no slice-back HBM passes; Pallas masks
    # the partial last block (elementwise op, so discarded lanes are harmless).
    chunks = pl.cdiv(n, _LANES)
    if chunks <= 16:
        block = n                                           # full-extent single block
    else:
        block = _pick_chunks_per_block(chunks, max_block_rows) * _LANES
    return pl.pallas_call(
        kernel,
        out_shape=jax.ShapeDtypeStruct((n,), jnp.float32),
        grid=(pl.cdiv(n, block),),
        in_specs=[pl.BlockSpec((block,), lambda i: (i,))],
        out_specs=pl.BlockSpec((block,), lambda i: (i,)),
        compiler_params=cparams,
        cost_estimate=cost,
    )(x)


def zshaped_mf_ref(x: jax.Array, a: float, b: float) -> jax.Array:
    """Pure-JAX reference mirroring the PyTorch forward (computed in f32)."""
    x = x.astype(jnp.float32)
    mid = (a + b) / 2.0
    y = jnp.ones_like(x)
    y = jnp.where((a <= x) & (x < mid), 1.0 - 2.0 * ((x - a) / (b - a)) ** 2.0, y)
    y = jnp.where((mid <= x) & (x <= b), 2.0 * ((x - b) / (b - a)) ** 2.0, y)
    y = jnp.where(x >= b, 0.0, y)
    return y


if __name__ == "__main__":
    # Deterministic "parameter" init (module __init__ takes scalars a, b).
    a, b = 0.25, 0.75
    key = jax.random.PRNGKey(0)

    # 1) Aligned length: 2-D lane-dense path, single block.
    n = 4096
    x = jax.random.uniform(key, (n,), dtype=jnp.float32, minval=-0.5, maxval=1.5)
    y = jax.block_until_ready(zshaped_mf(x, a, b))
    assert y.shape == (n,) and y.dtype == jnp.float32
    assert jnp.allclose(y, zshaped_mf_ref(x, a, b), atol=1e-6, rtol=1e-6), \
        "mismatch vs reference (aligned, single block)"

    # 2) Ragged length (small): 1-D full-extent block, no pad / no slice.
    n2 = 5000
    x2 = jax.random.uniform(jax.random.PRNGKey(1), (n2,), dtype=jnp.float32,
                            minval=-0.5, maxval=1.5)
    y2 = jax.block_until_ready(zshaped_mf(x2, a, b))
    assert y2.shape == (n2,) and y2.dtype == jnp.float32
    assert jnp.allclose(y2, zshaped_mf_ref(x2, a, b), atol=1e-6, rtol=1e-6), \
        "mismatch vs reference (ragged, single block)"

    # 3) Aligned, forced multi-tile grid: exercises the pipelined 2-D path.
    n3 = 32 * _LANES  # rows=32 -> tm=8 -> grid=(4,)
    x3 = jax.random.uniform(jax.random.PRNGKey(2), (n3,), dtype=jnp.float32,
                            minval=-0.5, maxval=1.5)
    y3 = jax.block_until_ready(zshaped_mf(x3, a, b, max_block_rows=8))
    assert jnp.allclose(y3, zshaped_mf_ref(x3, a, b), atol=1e-6, rtol=1e-6), \
        "mismatch vs reference (aligned, tiled grid)"

    # 4) Ragged, forced multi-tile grid: exercises the masked partial last block (1-D).
    n4 = 40 * _LANES + 37
    x4 = jax.random.uniform(jax.random.PRNGKey(3), (n4,), dtype=jnp.float32,
                            minval=-0.5, maxval=1.5)
    y4 = jax.block_until_ready(zshaped_mf(x4, a, b, max_block_rows=8))
    assert y4.shape == (n4,)
    assert jnp.allclose(y4, zshaped_mf_ref(x4, a, b), atol=1e-6, rtol=1e-6), \
        "mismatch vs reference (ragged, tiled grid)"

    # 5) bf16 input: in-kernel cast, f32 output (as in the torch module).
    x5 = x.astype(jnp.bfloat16)
    y5 = jax.block_until_ready(zshaped_mf(x5, a, b))
    assert y5.dtype == jnp.float32
    assert jnp.allclose(y5, zshaped_mf_ref(x5, a, b), atol=1e-6, rtol=1e-6), \
        "mismatch vs reference (bf16 input)"

    print("KERNEL_OK")
</pallas_src>

<mosaic_0001>
module attributes {stable_mosaic.version = 11 : i64} {
  func.func @kernel(%arg0: i32, %arg1: memref<4x1024xf32, #tpu.memory_space<vmem>>, %arg2: memref<4x1024xf32, #tpu.memory_space<vmem>>) attributes {dimension_semantics = [#tpu.dimension_semantics<parallel>], iteration_bounds = array<i64: 1>, scalar_prefetch = 0 : i64, scratch_operands = 0 : i64, tpu.core_type = #tpu.core_type<tc>, window_params = [{transform_indices = @transform_0, window_bounds = array<i64: 4, 1024>}, {transform_indices = @transform_1, window_bounds = array<i64: 4, 1024>}]} {
    %c0 = arith.constant 0 : index
    %c0_0 = arith.constant 0 : index
    %0 = vector.load %arg1[%c0, %c0_0] : memref<4x1024xf32, #tpu.memory_space<vmem>>, vector<4x1024xf32>
    %cst = arith.constant 2.500000e-01 : f32
    %1 = vector.broadcast %cst : f32 to vector<4x1024xf32>
    %2 = arith.subf %0, %1 : vector<4x1024xf32>
    %cst_1 = arith.constant 2.000000e+00 : f32
    %3 = vector.broadcast %cst_1 : f32 to vector<4x1024xf32>
    %4 = arith.mulf %2, %3 : vector<4x1024xf32>
    %cst_2 = arith.constant 7.500000e-01 : f32
    %5 = vector.broadcast %cst_2 : f32 to vector<4x1024xf32>
    %6 = arith.subf %0, %5 : vector<4x1024xf32>
    %cst_3 = arith.constant 2.000000e+00 : f32
    %7 = vector.broadcast %cst_3 : f32 to vector<4x1024xf32>
    %8 = arith.mulf %6, %7 : vector<4x1024xf32>
    %9 = arith.mulf %4, %4 : vector<4x1024xf32>
    %cst_4 = arith.constant 2.000000e+00 : f32
    %10 = vector.broadcast %cst_4 : f32 to vector<4x1024xf32>
    %11 = arith.mulf %10, %9 : vector<4x1024xf32>
    %cst_5 = arith.constant 1.000000e+00 : f32
    %12 = vector.broadcast %cst_5 : f32 to vector<4x1024xf32>
    %13 = arith.subf %12, %11 : vector<4x1024xf32>
    %14 = arith.mulf %8, %8 : vector<4x1024xf32>
    %cst_6 = arith.constant 2.000000e+00 : f32
    %15 = vector.broadcast %cst_6 : f32 to vector<4x1024xf32>
    %16 = arith.mulf %15, %14 : vector<4x1024xf32>
    %cst_7 = arith.constant 1.000000e+00 : f32
    %17 = vector.broadcast %cst_7 : f32 to vector<4x1024xf32>
    %cst_8 = arith.constant 2.500000e-01 : f32
    %18 = vector.broadcast %cst_8 : f32 to vector<4x1024xf32>
    %19 = arith.cmpf oge, %0, %18 : vector<4x1024xf32>
    %cst_9 = arith.constant 5.000000e-01 : f32
    %20 = vector.broadcast %cst_9 : f32 to vector<4x1024xf32>
    %21 = arith.cmpf olt, %0, %20 : vector<4x1024xf32>
    %22 = arith.andi %19, %21 : vector<4x1024xi1>
    %23 = arith.select %22, %13, %17 : vector<4x1024xi1>, vector<4x1024xf32>
    %cst_10 = arith.constant 5.000000e-01 : f32
    %24 = vector.broadcast %cst_10 : f32 to vector<4x1024xf32>
    %25 = arith.cmpf oge, %0, %24 : vector<4x1024xf32>
    %cst_11 = arith.constant 7.500000e-01 : f32
    %26 = vector.broadcast %cst_11 : f32 to vector<4x1024xf32>
    %27 = arith.cmpf ole, %0, %26 : vector<4x1024xf32>
    %28 = arith.andi %25, %27 : vector<4x1024xi1>
    %29 = arith.select %28, %16, %23 : vector<4x1024xi1>, vector<4x1024xf32>
    %cst_12 = arith.constant 7.500000e-01 : f32
    %30 = vector.broadcast %cst_12 : f32 to vector<4x1024xf32>
    %31 = arith.cmpf oge, %0, %30 : vector<4x1024xf32>
    %cst_13 = arith.constant 0.000000e+00 : f32
    %32 = vector.broadcast %cst_13 : f32 to vector<4x1024xf32>
    %33 = arith.select %31, %32, %29 : vector<4x1024xi1>, vector<4x1024xf32>
    %c0_14 = arith.constant 0 : index
    %c0_15 = arith.constant 0 : index
    %34 = vector.load %arg2[%c0_14, %c0_15] : memref<4x1024xf32, #tpu.memory_space<vmem>>, vector<4x1024xf32>
    tpu.vector_store %arg2[%c0_14, %c0_15], %33 {strides = array<i32>} : memref<4x1024xf32, #tpu.memory_space<vmem>>, vector<4x1024xf32>,
    return
  }
  func.func @transform_0(%arg0: i32) -> (i32, i32) {
    %c0_i32 = arith.constant 0 : i32
    %c0_i32_0 = arith.constant 0 : i32
    return %arg0, %c0_i32 : i32, i32
  }
  func.func @transform_1(%arg0: i32) -> (i32, i32) {
    %c0_i32 = arith.constant 0 : i32
    %c0_i32_0 = arith.constant 0 : i32
    return %arg0, %c0_i32 : i32, i32
  }
}

</mosaic_0001>

<bundles_post_ra>
// kernel: tpu_custom_call.1
= control target key start
LH: loop header
LB: loop body
LE: loop exit
PB: predicated region body
PF: predicated region fallthrough
CT: control target
= control target key end

     0   :  { %6 = vsyncpa [#allocation3], 0  ;;  %s256_s0 = inlined_call_operand.hbm [shape: f32[4,1024], index: 0, kind: input, shape index: {}]   ;;  %s257_s1 = inlined_call_operand.hbm [shape: f32[4,1024], index: 1, kind: output, shape index: {}]  }
   0x1   :  { %7 = vsyncpa [#allocation4], 0  ;;  %s178_s6 = smov [#allocation2]   ;;  %s130_s10 = scalar_lea.hbm %s256_s0, 512 }
   0x2   :  { %s14_s7 = sshll.u32 %s178_s6, 4  ;;  %p131_p0 = scmp.ne.s32.totalorder %s256_s0, %s130_s10  ;;  %s15_s7 = int_to_ptr.vmem [resolvable:$true] %s14_s7 }
   0x3   :  { %p134_p1 = scmp.lt.u32.totalorder %s130_s10, %s256_s0 }
   0x5   :  { %p136_p2 = pnand %p134_p1, %p131_p0 }
   0x7   :  { %139 = shalt.err (!%p136_p2)
}
   0x8   :  { %s140_s15 = scalar_lea.vmem %s15_s7, 512  ;;  %p145_p4 = scmp.lt.s32.totalorder %s15_s7, %s15_s7 }
   0x9   :  { %p141_p3 = scmp.ne.s32.totalorder %s15_s7, %s140_s15  ;;  %p146_p5 = scmp.lt.s32.totalorder %s140_s15, %s140_s15 }
   0xb   :  { %p147_p6 = por %p146_p5, %p145_p4 }
   0xd   :  { %p148_p7 = pnand %p147_p6, %p141_p3 }
   0xf   :  { %151 = shalt.err (!%p148_p7)
}
  0x10   :  { %17 = dma.hbm_to_vmem [thread:$0]  %s256_s0, 512, %s15_s7, [#allocation3]  }
  0x11   :  { %174 = dma.done.wait [#allocation3], 512  }
  0x12   :  { %175 = vsyncadd [#allocation3], 4294966784  ;;  %v21_v0 = vld [vmem:[#allocation2] sm:$0xff]  ;;  %v22_v1 = vld [vmem:[#allocation2 + $0x8] sm:$0xff]  ;;  %s179_s0 = smov [#allocation5]  }
  0x13   :  { %v120_v2 = vadd.f32 -0.25, %v21_v0  ;;  %v124_v3 = vadd.f32 -0.75, %v21_v0  ;;  %vm61_vm0 = vcmp.ge.f32.partialorder %v21_v0, 0.25  ;;  %vm65_vm1 = vcmp.lt.f32.partialorder %v21_v0, 0.5  ;;  %v202_v8 = vld [vmem:[#allocation2 + $0x10] sm:$0xff]  ;;  %v24_v19 = vld [vmem:[#allocation2 + $0x18] sm:$0xff] }
  0x14   :  { %v121_v4 = vadd.f32 -0.25, %v22_v1  ;;  %vm77_vm2 = vcmp.ge.f32.partialorder %v21_v0, 0.5  ;;  %v125_v7 = vadd.f32 -0.75, %v22_v1  ;;  %vm81_vm3 = vcmp.le.f32.partialorder %v21_v0, 0.75  ;;  %vm208_vm8 = vmand %vm61_vm0, %vm65_vm1  ;;  %s111_s18 = sshll.u32 %s179_s0, 4  ;;  %s112_s18 = int_to_ptr.vmem [resolvable:$true] %s111_s18 }
  0x15   :  { %v29_v5 = vmul.f32 2.0, %v120_v2  ;;  %v37_v6 = vmul.f32 2.0, %v124_v3  ;;  %vm93_vm4 = vcmp.ge.f32.partialorder %v21_v0, 0.75  ;;  %vm62_vm5 = vcmp.ge.f32.partialorder %v22_v1, 0.25  ;;  %vm214_vm11 = vmand %vm77_vm2, %vm81_vm3  ;;  %s152_s19 = scalar_lea.vmem %s112_s18, 512  ;;  %p157_p9 = scmp.lt.s32.totalorder %s112_s18, %s112_s18 }
  0x16   :  { %v30_v9 = vmul.f32 2.0, %v121_v4  ;;  %v38_v12 = vmul.f32 2.0, %v125_v7  ;;  %vm66_vm6 = vcmp.lt.f32.partialorder %v22_v1, 0.5  ;;  %vm78_vm7 = vcmp.ge.f32.partialorder %v22_v1, 0.5  ;;  %p153_p8 = scmp.ne.s32.totalorder %s112_s18, %s152_s19  ;;  %p158_p10 = scmp.lt.s32.totalorder %s152_s19, %s152_s19 }
  0x17   :  { %v41_v10 = vmul.f32 %v29_v5, %v29_v5  ;;  %v53_v11 = vmul.f32 %v37_v6, %v37_v6  ;;  %v122_v14 = vadd.f32 -0.25, %v202_v8  ;;  %v126_v15 = vadd.f32 -0.75, %v202_v8  ;;  %vm70_vm12 = vmand %vm62_vm5, %vm66_vm6 }
  0x18   :  { %v42_v13 = vmul.f32 %v30_v9, %v30_v9  ;;  %v54_v18 = vmul.f32 %v38_v12, %v38_v12  ;;  %vm82_vm9 = vcmp.le.f32.partialorder %v22_v1, 0.75  ;;  %vm94_vm10 = vcmp.ge.f32.partialorder %v22_v1, 0.75  ;;  %p159_p11 = por %p158_p10, %p157_p9 }
  0x19   :  { %v45_v16 = vmul.f32 2.0, %v41_v10  ;;  %v57_v20 = vmul.f32 2.0, %v53_v11  ;;  %v31_v23 = vmul.f32 2.0, %v122_v14  ;;  %v39_v24 = vmul.f32 2.0, %v126_v15  ;;  %vm223_vm15 = vmand %vm78_vm7, %vm82_vm9 }
  0x1a   :  { %v46_v22 = vmul.f32 2.0, %v42_v13  ;;  %v58_v26 = vmul.f32 2.0, %v54_v18  ;;  %vm63_vm13 = vcmp.ge.f32.partialorder %v202_v8, 0.25  ;;  %vm67_vm14 = vcmp.lt.f32.partialorder %v202_v8, 0.5  ;;  %p160_p12 = pnand %p159_p11, %p153_p8 }
  0x1b   :  { %v49_v25 = vsub.f32 1.0, %v45_v16  ;;  %v43_v29 = vmul.f32 %v31_v23, %v31_v23  ;;  %v55_v30 = vmul.f32 %v39_v24, %v39_v24  ;;  %v123_v31 = vadd.f32 -0.25, %v24_v19  ;;  %vm71_vm2 = vmand %vm63_vm13, %vm67_vm14 }
  0x1c   :  { %v50_v27 = vsub.f32 1.0, %v46_v22  ;;  %vm79_vm0 = vcmp.ge.f32.partialorder %v202_v8, 0.5  ;;  %vm83_vm1 = vcmp.le.f32.partialorder %v202_v8, 0.75  ;;  %v127_v33 = vadd.f32 -0.75, %v24_v19 }
  0x1d   :  { %v73_v32 = vsel %vm208_vm8, %v49_v25, 1.0  ;;  %v47_v36 = vmul.f32 2.0, %v43_v29  ;;  %v59_v37 = vmul.f32 2.0, %v55_v30  ;;  %v32_v40 = vmul.f32 2.0, %v123_v31  ;;  %vm87_vm3 = vmand %vm79_vm0, %vm83_vm1 }
  0x1e   :  { %v89_v34 = vsel %vm214_vm11, %v57_v20, %v73_v32  ;;  %v74_v35 = vsel %vm70_vm12, %v50_v27, 1.0  ;;  %v40_v41 = vmul.f32 2.0, %v127_v33  ;;  %vm95_vm5 = vcmp.ge.f32.partialorder %v202_v8, 0.75 }
  0x1f   :  { %v97_v38 = vsel %vm93_vm4, 0.0, %v89_v34  ;;  %v90_v39 = vsel %vm223_vm15, %v58_v26, %v74_v35  ;;  %v51_v43 = vsub.f32 1.0, %v47_v36  ;;  %v44_v44 = vmul.f32 %v32_v40, %v32_v40 }
  0x20   :  { %101 = vst [vmem:[#allocation5] sm:$0xff] %v97_v38  ;;  %v98_v42 = vsel %vm94_vm10, 0.0, %v90_v39  ;;  %v56_v45 = vmul.f32 %v40_v41, %v40_v41  ;;  %vm64_vm4 = vcmp.ge.f32.partialorder %v24_v19, 0.25  ;;  %vm68_vm6 = vcmp.lt.f32.partialorder %v24_v19, 0.5 }
  0x21   :  { %102 = vst [vmem:[#allocation5 + $0x8] sm:$0xff] %v98_v42  ;;  %v75_v46 = vsel %vm71_vm2, %v51_v43, 1.0  ;;  %vm80_vm7 = vcmp.ge.f32.partialorder %v24_v19, 0.5  ;;  %vm84_vm8 = vcmp.le.f32.partialorder %v24_v19, 0.75  ;;  %v48_v48 = vmul.f32 2.0, %v44_v44  ;;  %vm72_vm9 = vmand %vm64_vm4, %vm68_vm6 }
  0x22   :  { %v91_v47 = vsel %vm87_vm3, %v59_v37, %v75_v46  ;;  %v60_v50 = vmul.f32 2.0, %v56_v45  ;;  %vm88_vm10 = vmand %vm80_vm7, %vm84_vm8  ;;  %vm96_vm11 = vcmp.ge.f32.partialorder %v24_v19, 0.75 }
  0x23   :  { %v99_v49 = vsel %vm95_vm5, 0.0, %v91_v47  ;;  %v52_v51 = vsub.f32 1.0, %v48_v48 }
  0x24   :  { %103 = vst [vmem:[#allocation5 + $0x10] sm:$0xff] %v99_v49 }
  0x25   :  { %v76_v52 = vsel %vm72_vm9, %v52_v51, 1.0 }
  0x26   :  { %v92_v53 = vsel %vm88_vm10, %v60_v50, %v76_v52 }
  0x27   :  { %v100_v54 = vsel %vm96_vm11, 0.0, %v92_v53 }
  0x28   :  { %104 = vst [vmem:[#allocation5 + $0x18] sm:$0xff] %v100_v54 }
  0x29   :  { %163 = shalt.err (!%p160_p12)
}
  0x2a   :  { %s164_s22 = scalar_lea.hbm %s257_s1, 512 }
  0x2b   :  { %p165_p13 = scmp.ne.s32.totalorder %s257_s1, %s164_s22  ;;  %p168_p0 = scmp.lt.u32.totalorder %s164_s22, %s257_s1 }
  0x2d   :  { %p170_p1 = pnand %p168_p0, %p165_p13 }
  0x2f   :  { %173 = shalt.err (!%p170_p1)
}
  0x30   :  { %114 = dma.vmem_to_hbm [thread:$0]  %s112_s18, 512, %s257_s1, [#allocation4]  }
  0x31   :  { %176 = dma.done.wait [#allocation4], 512  }
  0x32   :  { %177 = vsyncadd [#allocation4], 4294966784 }
  0x33   :  { %118 = vsyncpa [#allocation3], 1 }
  0x34   :  { %119 = vsyncpa [#allocation4], 1 }

</bundles_post_ra>
